<compile_context>
chip_gen: v7x
topology: tpu7x:2x2x1
jax: 0.10.0
libtpu: 0.0.40
codegen_flags: <defaults>
</compile_context>

<pallas_src>
import functools

import jax
import jax.numpy as jnp
from jax.experimental import pallas as pl
from jax.experimental.pallas import tpu as pltpu

K = 3        # conv kernel size
STRIDE = 2   # downsample stride

_ROW_TARGET = 512                       # target output pixels per grid step
_WEIGHT_TILE_BYTES = 16 * 1024 * 1024   # double-buffered weight-tile budget


def _pick_row_tile(ho, wo, target_rows=_ROW_TARGET):
    """Largest divisor of `ho` with tho*wo <= target and (tho*wo) % 8 == 0."""
    divs = [d for d in range(1, ho + 1) if ho % d == 0]
    aligned = [d for d in divs if (d * wo) % 8 == 0]
    if not aligned:
        return ho
    under = [d for d in aligned if d * wo <= target_rows]
    return max(under) if under else min(aligned)


def _pick_cout_tile(coutp, cin, itemsize):
    """Prefer tco=256 (full MXU N on v6e/v7x), then 128, within VMEM budget."""
    for tco in (256, 128):
        if coutp % tco == 0 and 2 * K * K * cin * tco * itemsize <= _WEIGHT_TILE_BYTES:
            return tco
    return coutp


def _downsample_conv_kernel(xk0_ref, xk1_ref, xk2_ref, w_ref, b_ref, o_ref):
    """One (cout-block, batch, row-block) tile per grid step.

    xk{0,1,2}_ref: (1, tho, 3, Wo, Cin)  row-phase inputs for kh = 0, 1, 2;
                                         dim 2 enumerates the kw column taps
    w_ref:         (1, 3, 3, Cin, tco)   pre-tiled weights
    b_ref:         (1, tco)              bias
    o_ref:         (1, tho*Wo, tco)      output block (rows flattened)
    """
    tho = xk0_ref.shape[1]
    wo = xk0_ref.shape[3]
    cin = xk0_ref.shape[4]
    rows = tho * wo

    # 9 accumulating GEMMs (K = Cin) summed in one expression: no explicit
    # VMEM accumulator round trips, bias + cast fused into the single store.
    acc = None
    for kh, xr in enumerate((xk0_ref, xk1_ref, xk2_ref)):
        for kw in range(K):
            a = xr[0, :, kw, :, :].reshape(rows, cin)
            p = jnp.dot(a, w_ref[0, kh, kw],
                        preferred_element_type=jnp.float32)
            acc = p if acc is None else acc + p

    o_ref[0] = (acc + b_ref[...].astype(jnp.float32)).astype(o_ref.dtype)


@functools.partial(jax.jit, static_argnames=("compute_dtype",))
def downsample(x_nchw, w_oihw, bias, *, compute_dtype=None):
    """Forward pass of SD `Downsample` (conv path).

    x_nchw: (B, C, H, W)
    w_oihw: (Cout, Cin, 3, 3)  PyTorch conv weight layout
    bias:   (Cout,)
    returns (B, Cout, H//2, W//2)
    """
    B, C, H, W = x_nchw.shape
    Cout = w_oihw.shape[0]
    assert H % 2 == 0 and W % 2 == 0, "SD Downsample expects even H, W"
    Ho, Wo = H // STRIDE, W // STRIDE

    if compute_dtype is not None:          # e.g. bf16 on v5e (HBM-bound kernel)
        x_nchw = x_nchw.astype(compute_dtype)
        w_oihw = w_oihw.astype(compute_dtype)

    # ---- activation layout prep: one fused gather per kh row phase --------
    x = jnp.transpose(x_nchw, (0, 2, 3, 1))                 # NHWC
    xp = jnp.pad(x, ((0, 0), (0, 1), (0, 1), (0, 0)))       # SD pad (0,1,0,1)

    def col_taps(row_phase):                 # (B, Ho, W+1, C) -> (B, Ho, 3, Wo, C)
        c0 = row_phase[:, :, 0:W:2, :]                      # input cols 2j
        c1 = row_phase[:, :, 1:W:2, :]                      # input cols 2j+1
        c2 = row_phase[:, :, 2:W + 2:2, :]                  # input cols 2j+2
        return jnp.stack([c0, c1, c2], axis=2)

    xk0 = col_taps(xp[:, 0:H:2])             # rows 0,2,...,H-2   (kh = 0)
    xk1 = col_taps(xp[:, 1:H:2])             # rows 1,3,...,H-1   (kh = 1)
    xk2 = col_taps(xp[:, 2:H + 2:2])         # rows 2,4,...,H     (kh = 2)

    # ---- weights / bias: pad Cout to a lane-friendly multiple, pre-tile ----
    if Cout >= 128 and Cout % 128 != 0:
        coutp = ((Cout + 127) // 128) * 128
    else:
        coutp = Cout
    itemsize = x.dtype.itemsize
    tco = _pick_cout_tile(coutp, C, itemsize)
    n_co = coutp // tco

    wp, bp = w_oihw, bias
    if coutp != Cout:
        wp = jnp.pad(wp, ((0, coutp - Cout), (0, 0), (0, 0), (0, 0)))
        bp = jnp.pad(bp, ((0, coutp - Cout),))
    # OIHW -> (kh, kw, Cin, Coutp) -> contiguous per-tile (n_co, kh, kw, Cin, tco)
    wt = jnp.transpose(wp, (2, 3, 1, 0)).reshape(K, K, C, n_co, tco)
    wt = jnp.transpose(wt, (3, 0, 1, 2, 4))
    b2 = bp.reshape(1, coutp)

    tho = _pick_row_tile(Ho, Wo)
    rows = tho * Wo

    x_spec = pl.BlockSpec((1, tho, K, Wo, C), lambda co, b, r: (b, r, 0, 0, 0))

    out_flat = pl.pallas_call(
        _downsample_conv_kernel,
        out_shape=jax.ShapeDtypeStruct((B, Ho * Wo, coutp), x.dtype),
        grid_spec=pltpu.PrefetchScalarGridSpec(
            num_scalar_prefetch=0,
            # Cout-tile axis outermost: weight block index changes slowest, so
            # each weight tile is fetched once and reused across (batch, rows).
            grid=(n_co, B, Ho // tho),
            in_specs=[
                x_spec, x_spec, x_spec,
                pl.BlockSpec((1, K, K, C, tco), lambda co, b, r: (co, 0, 0, 0, 0)),
                pl.BlockSpec((1, tco), lambda co, b, r: (0, co)),
            ],
            out_specs=pl.BlockSpec((1, rows, tco), lambda co, b, r: (b, r, co)),
        ),
        compiler_params=pltpu.CompilerParams(
            dimension_semantics=("parallel", "parallel", "parallel"),
            vmem_limit_bytes=32 * 1024 * 1024,
        ),
    )(xk0, xk1, xk2, wt, b2)

    out = out_flat[:, :, :Cout] if coutp != Cout else out_flat
    out = out.reshape(B, Ho, Wo, Cout)
    return jnp.transpose(out, (0, 3, 1, 2))                 # back to NCHW


if __name__ == "__main__":
    B, C, H, W = 2, 4, 16, 16

    key = jax.random.PRNGKey(0)
    kx, kw_key, kb = jax.random.split(key, 3)
    x = jax.random.normal(kx, (B, C, H, W), dtype=jnp.float32)
    # deterministic synthetic parameters (Conv2d(C, C, 3, stride=2))
    weight = jax.random.normal(kw_key, (C, C, K, K), dtype=jnp.float32) * 0.1
    bias = jax.random.normal(kb, (C,), dtype=jnp.float32) * 0.1

    out = downsample(x, weight, bias)
    out = jax.block_until_ready(out)

    # pure-JAX reference (same semantics as torch: pad (0,1,0,1) + conv s=2)
    ref = jax.lax.conv_general_dilated(
        x, weight, window_strides=(STRIDE, STRIDE),
        padding=((0, 1), (0, 1)),
        dimension_numbers=("NCHW", "OIHW", "NCHW"),
    ) + bias[None, :, None, None]

    assert out.shape == (B, C, H // 2, W // 2), out.shape
    assert jnp.allclose(out, ref, atol=1e-4, rtol=1e-4), float(
        jnp.max(jnp.abs(out - ref)))
    print("KERNEL_OK")
</pallas_src>

<mosaic_0001>
module attributes {stable_mosaic.version = 11 : i64} {
  func.func @_downsample_conv_kernel(%arg0: i32, %arg1: i32, %arg2: i32, %arg3: memref<1x8x3x8x4xf32, #tpu.memory_space<vmem>>, %arg4: memref<1x8x3x8x4xf32, #tpu.memory_space<vmem>>, %arg5: memref<1x8x3x8x4xf32, #tpu.memory_space<vmem>>, %arg6: memref<1x3x3x4x4xf32, #tpu.memory_space<vmem>>, %arg7: memref<1x4xf32, #tpu.memory_space<vmem>>, %arg8: memref<1x64x4xf32, #tpu.memory_space<vmem>>) attributes {dimension_semantics = [#tpu.dimension_semantics<parallel>, #tpu.dimension_semantics<parallel>, #tpu.dimension_semantics<parallel>], iteration_bounds = array<i64: 1, 2, 1>, scalar_prefetch = 0 : i64, scratch_operands = 0 : i64, tpu.core_type = #tpu.core_type<tc>, window_params = [{transform_indices = @transform_0, window_bounds = array<i64: 1, 8, 3, 8, 4>}, {transform_indices = @transform_1, window_bounds = array<i64: 1, 8, 3, 8, 4>}, {transform_indices = @transform_2, window_bounds = array<i64: 1, 8, 3, 8, 4>}, {transform_indices = @transform_3, window_bounds = array<i64: 1, 3, 3, 4, 4>}, {transform_indices = @transform_4, window_bounds = array<i64: 1, 4>}, {transform_indices = @transform_5, window_bounds = array<i64: 1, 64, 4>}]} {
    %c0 = arith.constant 0 : index
    %c0_0 = arith.constant 0 : index
    %c0_1 = arith.constant 0 : index
    %c0_2 = arith.constant 0 : index
    %c0_3 = arith.constant 0 : index
    %0 = vector.load %arg3[%c0, %c0_0, %c0_1, %c0_2, %c0_3] : memref<1x8x3x8x4xf32, #tpu.memory_space<vmem>>, vector<1x8x1x8x4xf32>
    %1 = vector.shape_cast %0 : vector<1x8x1x8x4xf32> to vector<8x8x4xf32>
    %2 = vector.shape_cast %1 : vector<8x8x4xf32> to vector<64x4xf32>
    %c0_4 = arith.constant 0 : index
    %c0_5 = arith.constant 0 : index
    %c0_6 = arith.constant 0 : index
    %c0_7 = arith.constant 0 : index
    %c0_8 = arith.constant 0 : index
    %3 = vector.load %arg6[%c0_4, %c0_5, %c0_6, %c0_7, %c0_8] : memref<1x3x3x4x4xf32, #tpu.memory_space<vmem>>, vector<1x1x1x4x4xf32>
    %4 = vector.shape_cast %3 : vector<1x1x1x4x4xf32> to vector<4x4xf32>
    %cst = arith.constant dense<0.000000e+00> : vector<64x4xf32>
    %5 = tpu.matmul %2, %4, %cst {dimension_numbers = #tpu.dot_dimension_numbers<[1], [0], [0], [1], [0, 0, 1, 1], [], []>} : vector<64x4xf32>, vector<4x4xf32>, vector<64x4xf32> -> vector<64x4xf32>
    %c0_9 = arith.constant 0 : index
    %c0_10 = arith.constant 0 : index
    %c1 = arith.constant 1 : index
    %c0_11 = arith.constant 0 : index
    %c0_12 = arith.constant 0 : index
    %6 = vector.load %arg3[%c0_9, %c0_10, %c1, %c0_11, %c0_12] : memref<1x8x3x8x4xf32, #tpu.memory_space<vmem>>, vector<1x8x1x8x4xf32>
    %7 = vector.shape_cast %6 : vector<1x8x1x8x4xf32> to vector<8x8x4xf32>
    %8 = vector.shape_cast %7 : vector<8x8x4xf32> to vector<64x4xf32>
    %c0_13 = arith.constant 0 : index
    %c0_14 = arith.constant 0 : index
    %c1_15 = arith.constant 1 : index
    %c0_16 = arith.constant 0 : index
    %c0_17 = arith.constant 0 : index
    %9 = vector.load %arg6[%c0_13, %c0_14, %c1_15, %c0_16, %c0_17] : memref<1x3x3x4x4xf32, #tpu.memory_space<vmem>>, vector<1x1x1x4x4xf32>
    %10 = vector.shape_cast %9 : vector<1x1x1x4x4xf32> to vector<4x4xf32>
    %cst_18 = arith.constant dense<0.000000e+00> : vector<64x4xf32>
    %11 = tpu.matmul %8, %10, %cst_18 {dimension_numbers = #tpu.dot_dimension_numbers<[1], [0], [0], [1], [0, 0, 1, 1], [], []>} : vector<64x4xf32>, vector<4x4xf32>, vector<64x4xf32> -> vector<64x4xf32>
    %12 = arith.addf %5, %11 : vector<64x4xf32>
    %c0_19 = arith.constant 0 : index
    %c0_20 = arith.constant 0 : index
    %c2 = arith.constant 2 : index
    %c0_21 = arith.constant 0 : index
    %c0_22 = arith.constant 0 : index
    %13 = vector.load %arg3[%c0_19, %c0_20, %c2, %c0_21, %c0_22] : memref<1x8x3x8x4xf32, #tpu.memory_space<vmem>>, vector<1x8x1x8x4xf32>
    %14 = vector.shape_cast %13 : vector<1x8x1x8x4xf32> to vector<8x8x4xf32>
    %15 = vector.shape_cast %14 : vector<8x8x4xf32> to vector<64x4xf32>
    %c0_23 = arith.constant 0 : index
    %c0_24 = arith.constant 0 : index
    %c2_25 = arith.constant 2 : index
    %c0_26 = arith.constant 0 : index
    %c0_27 = arith.constant 0 : index
    %16 = vector.load %arg6[%c0_23, %c0_24, %c2_25, %c0_26, %c0_27] : memref<1x3x3x4x4xf32, #tpu.memory_space<vmem>>, vector<1x1x1x4x4xf32>
    %17 = vector.shape_cast %16 : vector<1x1x1x4x4xf32> to vector<4x4xf32>
    %cst_28 = arith.constant dense<0.000000e+00> : vector<64x4xf32>
    %18 = tpu.matmul %15, %17, %cst_28 {dimension_numbers = #tpu.dot_dimension_numbers<[1], [0], [0], [1], [0, 0, 1, 1], [], []>} : vector<64x4xf32>, vector<4x4xf32>, vector<64x4xf32> -> vector<64x4xf32>
    %19 = arith.addf %12, %18 : vector<64x4xf32>
    %c0_29 = arith.constant 0 : index
    %c0_30 = arith.constant 0 : index
    %c0_31 = arith.constant 0 : index
    %c0_32 = arith.constant 0 : index
    %c0_33 = arith.constant 0 : index
    %20 = vector.load %arg4[%c0_29, %c0_30, %c0_31, %c0_32, %c0_33] : memref<1x8x3x8x4xf32, #tpu.memory_space<vmem>>, vector<1x8x1x8x4xf32>
    %21 = vector.shape_cast %20 : vector<1x8x1x8x4xf32> to vector<8x8x4xf32>
    %22 = vector.shape_cast %21 : vector<8x8x4xf32> to vector<64x4xf32>
    %c0_34 = arith.constant 0 : index
    %c1_35 = arith.constant 1 : index
    %c0_36 = arith.constant 0 : index
    %c0_37 = arith.constant 0 : index
    %c0_38 = arith.constant 0 : index
    %23 = vector.load %arg6[%c0_34, %c1_35, %c0_36, %c0_37, %c0_38] : memref<1x3x3x4x4xf32, #tpu.memory_space<vmem>>, vector<1x1x1x4x4xf32>
    %24 = vector.shape_cast %23 : vector<1x1x1x4x4xf32> to vector<4x4xf32>
    %cst_39 = arith.constant dense<0.000000e+00> : vector<64x4xf32>
    %25 = tpu.matmul %22, %24, %cst_39 {dimension_numbers = #tpu.dot_dimension_numbers<[1], [0], [0], [1], [0, 0, 1, 1], [], []>} : vector<64x4xf32>, vector<4x4xf32>, vector<64x4xf32> -> vector<64x4xf32>
    %26 = arith.addf %19, %25 : vector<64x4xf32>
    %c0_40 = arith.constant 0 : index
    %c0_41 = arith.constant 0 : index
    %c1_42 = arith.constant 1 : index
    %c0_43 = arith.constant 0 : index
    %c0_44 = arith.constant 0 : index
    %27 = vector.load %arg4[%c0_40, %c0_41, %c1_42, %c0_43, %c0_44] : memref<1x8x3x8x4xf32, #tpu.memory_space<vmem>>, vector<1x8x1x8x4xf32>
    %28 = vector.shape_cast %27 : vector<1x8x1x8x4xf32> to vector<8x8x4xf32>
    %29 = vector.shape_cast %28 : vector<8x8x4xf32> to vector<64x4xf32>
    %c0_45 = arith.constant 0 : index
    %c1_46 = arith.constant 1 : index
    %c1_47 = arith.constant 1 : index
    %c0_48 = arith.constant 0 : index
    %c0_49 = arith.constant 0 : index
    %30 = vector.load %arg6[%c0_45, %c1_46, %c1_47, %c0_48, %c0_49] : memref<1x3x3x4x4xf32, #tpu.memory_space<vmem>>, vector<1x1x1x4x4xf32>
    %31 = vector.shape_cast %30 : vector<1x1x1x4x4xf32> to vector<4x4xf32>
    %cst_50 = arith.constant dense<0.000000e+00> : vector<64x4xf32>
    %32 = tpu.matmul %29, %31, %cst_50 {dimension_numbers = #tpu.dot_dimension_numbers<[1], [0], [0], [1], [0, 0, 1, 1], [], []>} : vector<64x4xf32>, vector<4x4xf32>, vector<64x4xf32> -> vector<64x4xf32>
    %33 = arith.addf %26, %32 : vector<64x4xf32>
    %c0_51 = arith.constant 0 : index
    %c0_52 = arith.constant 0 : index
    %c2_53 = arith.constant 2 : index
    %c0_54 = arith.constant 0 : index
    %c0_55 = arith.constant 0 : index
    %34 = vector.load %arg4[%c0_51, %c0_52, %c2_53, %c0_54, %c0_55] : memref<1x8x3x8x4xf32, #tpu.memory_space<vmem>>, vector<1x8x1x8x4xf32>
    %35 = vector.shape_cast %34 : vector<1x8x1x8x4xf32> to vector<8x8x4xf32>
    %36 = vector.shape_cast %35 : vector<8x8x4xf32> to vector<64x4xf32>
    %c0_56 = arith.constant 0 : index
    %c1_57 = arith.constant 1 : index
    %c2_58 = arith.constant 2 : index
    %c0_59 = arith.constant 0 : index
    %c0_60 = arith.constant 0 : index
    %37 = vector.load %arg6[%c0_56, %c1_57, %c2_58, %c0_59, %c0_60] : memref<1x3x3x4x4xf32, #tpu.memory_space<vmem>>, vector<1x1x1x4x4xf32>
    %38 = vector.shape_cast %37 : vector<1x1x1x4x4xf32> to vector<4x4xf32>
    %cst_61 = arith.constant dense<0.000000e+00> : vector<64x4xf32>
    %39 = tpu.matmul %36, %38, %cst_61 {dimension_numbers = #tpu.dot_dimension_numbers<[1], [0], [0], [1], [0, 0, 1, 1], [], []>} : vector<64x4xf32>, vector<4x4xf32>, vector<64x4xf32> -> vector<64x4xf32>
    %40 = arith.addf %33, %39 : vector<64x4xf32>
    %c0_62 = arith.constant 0 : index
    %c0_63 = arith.constant 0 : index
    %c0_64 = arith.constant 0 : index
    %c0_65 = arith.constant 0 : index
    %c0_66 = arith.constant 0 : index
    %41 = vector.load %arg5[%c0_62, %c0_63, %c0_64, %c0_65, %c0_66] : memref<1x8x3x8x4xf32, #tpu.memory_space<vmem>>, vector<1x8x1x8x4xf32>
    %42 = vector.shape_cast %41 : vector<1x8x1x8x4xf32> to vector<8x8x4xf32>
    %43 = vector.shape_cast %42 : vector<8x8x4xf32> to vector<64x4xf32>
    %c0_67 = arith.constant 0 : index
    %c2_68 = arith.constant 2 : index
    %c0_69 = arith.constant 0 : index
    %c0_70 = arith.constant 0 : index
    %c0_71 = arith.constant 0 : index
    %44 = vector.load %arg6[%c0_67, %c2_68, %c0_69, %c0_70, %c0_71] : memref<1x3x3x4x4xf32, #tpu.memory_space<vmem>>, vector<1x1x1x4x4xf32>
    %45 = vector.shape_cast %44 : vector<1x1x1x4x4xf32> to vector<4x4xf32>
    %cst_72 = arith.constant dense<0.000000e+00> : vector<64x4xf32>
    %46 = tpu.matmul %43, %45, %cst_72 {dimension_numbers = #tpu.dot_dimension_numbers<[1], [0], [0], [1], [0, 0, 1, 1], [], []>} : vector<64x4xf32>, vector<4x4xf32>, vector<64x4xf32> -> vector<64x4xf32>
    %47 = arith.addf %40, %46 : vector<64x4xf32>
    %c0_73 = arith.constant 0 : index
    %c0_74 = arith.constant 0 : index
    %c1_75 = arith.constant 1 : index
    %c0_76 = arith.constant 0 : index
    %c0_77 = arith.constant 0 : index
    %48 = vector.load %arg5[%c0_73, %c0_74, %c1_75, %c0_76, %c0_77] : memref<1x8x3x8x4xf32, #tpu.memory_space<vmem>>, vector<1x8x1x8x4xf32>
    %49 = vector.shape_cast %48 : vector<1x8x1x8x4xf32> to vector<8x8x4xf32>
    %50 = vector.shape_cast %49 : vector<8x8x4xf32> to vector<64x4xf32>
    %c0_78 = arith.constant 0 : index
    %c2_79 = arith.constant 2 : index
    %c1_80 = arith.constant 1 : index
    %c0_81 = arith.constant 0 : index
    %c0_82 = arith.constant 0 : index
    %51 = vector.load %arg6[%c0_78, %c2_79, %c1_80, %c0_81, %c0_82] : memref<1x3x3x4x4xf32, #tpu.memory_space<vmem>>, vector<1x1x1x4x4xf32>
    %52 = vector.shape_cast %51 : vector<1x1x1x4x4xf32> to vector<4x4xf32>
    %cst_83 = arith.constant dense<0.000000e+00> : vector<64x4xf32>
    %53 = tpu.matmul %50, %52, %cst_83 {dimension_numbers = #tpu.dot_dimension_numbers<[1], [0], [0], [1], [0, 0, 1, 1], [], []>} : vector<64x4xf32>, vector<4x4xf32>, vector<64x4xf32> -> vector<64x4xf32>
    %54 = arith.addf %47, %53 : vector<64x4xf32>
    %c0_84 = arith.constant 0 : index
    %c0_85 = arith.constant 0 : index
    %c2_86 = arith.constant 2 : index
    %c0_87 = arith.constant 0 : index
    %c0_88 = arith.constant 0 : index
    %55 = vector.load %arg5[%c0_84, %c0_85, %c2_86, %c0_87, %c0_88] : memref<1x8x3x8x4xf32, #tpu.memory_space<vmem>>, vector<1x8x1x8x4xf32>
    %56 = vector.shape_cast %55 : vector<1x8x1x8x4xf32> to vector<8x8x4xf32>
    %57 = vector.shape_cast %56 : vector<8x8x4xf32> to vector<64x4xf32>
    %c0_89 = arith.constant 0 : index
    %c2_90 = arith.constant 2 : index
    %c2_91 = arith.constant 2 : index
    %c0_92 = arith.constant 0 : index
    %c0_93 = arith.constant 0 : index
    %58 = vector.load %arg6[%c0_89, %c2_90, %c2_91, %c0_92, %c0_93] : memref<1x3x3x4x4xf32, #tpu.memory_space<vmem>>, vector<1x1x1x4x4xf32>
    %59 = vector.shape_cast %58 : vector<1x1x1x4x4xf32> to vector<4x4xf32>
    %cst_94 = arith.constant dense<0.000000e+00> : vector<64x4xf32>
    %60 = tpu.matmul %57, %59, %cst_94 {dimension_numbers = #tpu.dot_dimension_numbers<[1], [0], [0], [1], [0, 0, 1, 1], [], []>} : vector<64x4xf32>, vector<4x4xf32>, vector<64x4xf32> -> vector<64x4xf32>
    %61 = arith.addf %54, %60 : vector<64x4xf32>
    %c0_95 = arith.constant 0 : index
    %c0_96 = arith.constant 0 : index
    %62 = vector.load %arg7[%c0_95, %c0_96] : memref<1x4xf32, #tpu.memory_space<vmem>>, vector<1x4xf32>
    %63 = vector.broadcast %62 : vector<1x4xf32> to vector<64x4xf32>
    %64 = arith.addf %61, %63 : vector<64x4xf32>
    %c0_97 = arith.constant 0 : index
    %c0_98 = arith.constant 0 : index
    %c0_99 = arith.constant 0 : index
    %65 = vector.load %arg8[%c0_97, %c0_98, %c0_99] : memref<1x64x4xf32, #tpu.memory_space<vmem>>, vector<1x64x4xf32>
    %66 = vector.shape_cast %65 : vector<1x64x4xf32> to vector<64x4xf32>
    %67 = vector.shape_cast %64 : vector<64x4xf32> to vector<1x64x4xf32>
    tpu.vector_store %arg8[%c0_97, %c0_98, %c0_99], %67 {strides = array<i32>} : memref<1x64x4xf32, #tpu.memory_space<vmem>>, vector<1x64x4xf32>,
    return
  }
  func.func @transform_0(%arg0: i32, %arg1: i32, %arg2: i32) -> (i32, i32, i32, i32, i32) {
    %c0_i32 = arith.constant 0 : i32
    %c0_i32_0 = arith.constant 0 : i32
    %c0_i32_1 = arith.constant 0 : i32
    %c0_i32_2 = arith.constant 0 : i32
    return %arg1, %arg2, %c0_i32, %c0_i32_0, %c0_i32_1 : i32, i32, i32, i32, i32
  }
  func.func @transform_1(%arg0: i32, %arg1: i32, %arg2: i32) -> (i32, i32, i32, i32, i32) {
    %c0_i32 = arith.constant 0 : i32
    %c0_i32_0 = arith.constant 0 : i32
    %c0_i32_1 = arith.constant 0 : i32
    %c0_i32_2 = arith.constant 0 : i32
    return %arg1, %arg2, %c0_i32, %c0_i32_0, %c0_i32_1 : i32, i32, i32, i32, i32
  }
  func.func @transform_2(%arg0: i32, %arg1: i32, %arg2: i32) -> (i32, i32, i32, i32, i32) {
    %c0_i32 = arith.constant 0 : i32
    %c0_i32_0 = arith.constant 0 : i32
    %c0_i32_1 = arith.constant 0 : i32
    %c0_i32_2 = arith.constant 0 : i32
    return %arg1, %arg2, %c0_i32, %c0_i32_0, %c0_i32_1 : i32, i32, i32, i32, i32
  }
  func.func @transform_3(%arg0: i32, %arg1: i32, %arg2: i32) -> (i32, i32, i32, i32, i32) {
    %c0_i32 = arith.constant 0 : i32
    %c0_i32_0 = arith.constant 0 : i32
    %c0_i32_1 = arith.constant 0 : i32
    %c0_i32_2 = arith.constant 0 : i32
    %c0_i32_3 = arith.constant 0 : i32
    return %arg0, %c0_i32, %c0_i32_0, %c0_i32_1, %c0_i32_2 : i32, i32, i32, i32, i32
  }
  func.func @transform_4(%arg0: i32, %arg1: i32, %arg2: i32) -> (i32, i32) {
    %c0_i32 = arith.constant 0 : i32
    %c0_i32_0 = arith.constant 0 : i32
    return %c0_i32, %arg0 : i32, i32
  }
  func.func @transform_5(%arg0: i32, %arg1: i32, %arg2: i32) -> (i32, i32, i32) {
    %c0_i32 = arith.constant 0 : i32
    return %arg1, %arg2, %arg0 : i32, i32, i32
  }
}

</mosaic_0001>

<bundles_post_ra>
// kernel: downsample.1
= control target key start
LH: loop header
LB: loop body
LE: loop exit
PB: predicated region body
PF: predicated region fallthrough
CT: control target
= control target key end

     0   :  { %s2435_s18 = smov 0   ;;  %s2437_s19 = smov 0   ;;  %s2707_s0 = inlined_call_operand.vmem [shape: f32[2,8,3,8,4], index: 0, kind: input, shape index: {}]   ;;  %s2708_s1 = inlined_call_operand.vmem [shape: f32[2,8,3,8,4], index: 1, kind: input, shape index: {}]   ;;  %s2709_s2 = inlined_call_operand.vmem [shape: f32[2,8,3,8,4], index: 2, kind: input, shape index: {}]   ;;  %s2710_s3 = inlined_call_operand.vmem [shape: f32[1,3,3,4,4], index: 3, kind: input, shape index: {}]   ;;  %s2711_s4 = inlined_call_operand.vmem [shape: f32[1,4], index: 4, kind: input, shape index: {}]   ;;  %s2712_s5 = inlined_call_operand.vmem [shape: f32[2,64,4], index: 5, kind: output, shape index: {}]  }
   0x1   :  { %s2439_s20 = smov 0  }
   0x2 LB: > { %s30_s21 = sadd.s32 1, %s2399_s19  ;;  %p1936_p0 = scmp.ge.s32.totalorder %s2403_s20, 1  ;;  %s2403_s20 = sphi %s2439_s20, %s15_s20   ;;  %s2399_s19 = sphi %s2437_s19, %s2714_s19   ;;  %s2395_s18 = sphi %s2435_s18, %s2713_s18  }
   0x3   : > { %p32_p1 = scmp.ge.s32.totalorder %s30_s21, 2  ;;  %p272_p2 = scmp.lt.s32.totalorder %s2403_s20, 3 }
   0x5   : > { %s2716_s21 = smov (%p32_p1, %s30_s21), 0  ;;  %p273_p3 = pnand %p1936_p0, %p272_p2 }
   0x6   : > { %v1950_v0 = vld [vmem:[%s2710_s3 + $0x4] sm:$0xf] (!%p273_p3)  ;;  %vm439_vm0 = vcmask (!%p273_p3), 1043456   ;;  %v2459_v1 = vld [vmem:[%s2710_s3 + $0x10] sm:$0xf] (!%p273_p3)  ;;  %p341_p4 = scmp.lt.s32.totalorder (!%p273_p3), %s2395_s18, 1 }
   0x7   : > { %276 = sbr.rel (%p273_p3) target bundleno = 307 (0x133), region = 40  ;;  %2164 = vmatprep.subr.msk.mxu1 (!%p273_p3), %vm439_vm0, %v1950_v0  ;;  %2220 = vmatprep.subr.msk.mxu0 (!%p273_p3), %vm439_vm0, %v2459_v1  ;;  %v402_v2 = vld [vmem:[%s2710_s3] sm:$0xf] (!%p273_p3)  ;;  %v2023_v3 = vld [vmem:[%s2710_s3 + $0x14] sm:$0xf] (!%p273_p3)  ;;  %vm414_vm1 = vcmask (!%p273_p3), 31744  }
   0x8   : > { %2165 = vmatpush3.msk.msra.mxu1 (!%p273_p3), %vm439_vm0, %v1950_v0  ;;  %2221 = vmatpush3.msk.msra.mxu0 (!%p273_p3), %vm439_vm0, %v2459_v1  ;;  %v2033_v10 = vld [vmem:[%s2710_s3 + $0x18] sm:$0xf] (!%p273_p3)  ;;  %v1977_v11 = vld [vmem:[%s2710_s3 + $0x8] sm:$0xf] (!%p273_p3)  ;;  %v2051_v20 = vld [vmem:[%s2710_s3 + $0x1c] sm:$0xf] (!%p273_p3) }
   0x9   : > { %2178 = vmatprep.subr.msk.mxu1 (!%p273_p3), %vm439_vm0, %v402_v2  ;;  %2234 = vmatprep.subr.msk.mxu0 (!%p273_p3), %vm439_vm0, %v2023_v3  ;;  %v1987_v29 = vld [vmem:[%s2710_s3 + $0xc] sm:$0xf] (!%p273_p3)  ;;  %v2069_v38 = vld [vmem:[%s2710_s3 + $0x20] sm:$0xf] (!%p273_p3) }
   0xe   : > { %s2718_s18 = smov (!%p341_p4, %s2395_s18), 1 }
   0xf   : > { %s2478_s30 = smul.u32 192, %s2718_s18  ;;  %s2082_s29 = sshll.u32 %s2718_s18, 6 }
  0x10   : > { %s2680_s9 = scalar_lea.vmem %s2712_s5, %s2082_s29 }
  0x11   : > { %s2484_s8 = scalar_lea.vmem %s2707_s0, %s2478_s30  ;;  %s2490_s11 = scalar_lea.vmem %s2708_s1, %s2478_s30 }
  0x12   : > { %v1942_v4 = vld [vmem:[%s2484_s8 + $0x8] sm:$0xff]  ;;  %v1943_v6 = vld [vmem:[%s2484_s8 + $0x20] sm:$0xff]  ;;  %v1944_v8 = vld [vmem:[%s2484_s8 + $0x38] sm:$0xff]  ;;  %s2551_s24 = scalar_lea.vmem %s2709_s2, %s2478_s30 }
  0x13   : > { %v1997_v5 = vld [vmem:[%s2490_s11 + $0x8] sm:$0xff]  ;;  %2166 = vmatprep.mubr.msk.f32.mxu1 %vm414_vm1, %v1942_v4  ;;  %v1998_v7 = vld [vmem:[%s2490_s11 + $0x20] sm:$0xff]  ;;  %v1999_v9 = vld [vmem:[%s2490_s11 + $0x38] sm:$0xff] }
  0x14   : > { %2222 = vmatprep.mubr.msk.f32.mxu0 %vm414_vm1, %v1997_v5  ;;  %2167 = vmatmul.mubr.msk.f32.vlgmr.msra.gmra.mrb[0].mxu1 %vm414_vm1, %v1943_v6  ;;  %v1945_v12 = vld [vmem:[%s2484_s8 + $0x50] sm:$0xff]  ;;  %v1946_v14 = vld [vmem:[%s2484_s8 + $0x68] sm:$0xff]  ;;  %v1947_v16 = vld [vmem:[%s2484_s8 + $0x80] sm:$0xff] }
  0x15   : > { %2223 = vmatmul.mubr.msk.f32.vlgmr.msra.gmra.mrb[0].mxu0 %vm414_vm1, %v1998_v7  ;;  %2179 = vmatpush3.msk.msra.mxu1 %vm439_vm0, %v402_v2  ;;  %v2000_v13 = vld [vmem:[%s2490_s11 + $0x50] sm:$0xff]  ;;  %v2016_v17 = vld [vmem:[%s2490_s11 + $0x28] sm:$0xff]  ;;  %v1948_v18 = vld [vmem:[%s2484_s8 + $0x98] sm:$0xff] }
  0x16   : > { %2235 = vmatpush3.msk.msra.mxu0 %vm439_vm0, %v2023_v3  ;;  %2169 = vmatprep.mubr.msk.f32.mxu1 %vm414_vm1, %v1944_v8  ;;  %v2015_v15 = vld [vmem:[%s2490_s11 + $0x10] sm:$0xff]  ;;  %v2017_v19 = vld [vmem:[%s2490_s11 + $0x40] sm:$0xff]  ;;  %v2018_v22 = vld [vmem:[%s2490_s11 + $0x58] sm:$0xff] }
  0x17   : > { %2225 = vmatprep.mubr.msk.f32.mxu0 %vm414_vm1, %v1999_v9  ;;  %2248 = vmatprep.subr.msk.mxu0 %vm439_vm0, %v2033_v10  ;;  %v1949_v21 = vld [vmem:[%s2484_s8 + $0xb0] sm:$0xff]  ;;  %v394_v23 = vld [vmem:[%s2484_s8] sm:$0xff]  ;;  %v395_v25 = vld [vmem:[%s2484_s8 + $0x18] sm:$0xff] }
  0x18   : > { %2192 = vmatprep.subr.msk.mxu1 %vm439_vm0, %v1977_v11  ;;  %2170 = vmatmul.mubr.msk.f32.gmra.mrb[2].mxu1 %vm414_vm1, %v1945_v12  ;;  %v2019_v24 = vld [vmem:[%s2490_s11 + $0x70] sm:$0xff]  ;;  %v2020_v26 = vld [vmem:[%s2490_s11 + $0x88] sm:$0xff]  ;;  %v2021_v28 = vld [vmem:[%s2490_s11 + $0xa0] sm:$0xff] }
  0x19   : > { %2226 = vmatmul.mubr.msk.f32.gmra.mrb[2].mxu0 %vm414_vm1, %v2000_v13  ;;  %2172 = vmatprep.mubr.msk.f32.mxu1 %vm414_vm1, %v1946_v14  ;;  %v396_v27 = vld [vmem:[%s2484_s8 + $0x30] sm:$0xff]  ;;  %v397_v30 = vld [vmem:[%s2484_s8 + $0x48] sm:$0xff]  ;;  %v2022_v31 = vld [vmem:[%s2490_s11 + $0xb8] sm:$0xff] }
  0x1a   : > { %2236 = vmatprep.mubr.msk.f32.mxu0 %vm414_vm1, %v2015_v15  ;;  %v398_v32 = vld [vmem:[%s2484_s8 + $0x60] sm:$0xff]  ;;  %v399_v34 = vld [vmem:[%s2484_s8 + $0x78] sm:$0xff]  ;;  %v400_v36 = vld [vmem:[%s2484_s8 + $0x90] sm:$0xff] }
  0x1b   : > { %v1283_v33 = vld [vmem:[%s2551_s24] sm:$0xff]  ;;  %v1284_v35 = vld [vmem:[%s2551_s24 + $0x18] sm:$0xff]  ;;  %v1285_v37 = vld [vmem:[%s2551_s24 + $0x30] sm:$0xff] }
  0x1c   : > { %2173 = vmatmul.mubr.msk.f32.gmra.mrb[4].mxu1 %vm414_vm1, %v1947_v16  ;;  %v401_v39 = vld [vmem:[%s2484_s8 + $0xa8] sm:$0xff]  ;;  %v1969_v41 = vld [vmem:[%s2484_s8 + $0x10] sm:$0xff]  ;;  %v1287_v42 = vld [vmem:[%s2551_s24 + $0x60] sm:$0xff] }
  0x1d   : > { %2237 = vmatmul.mubr.msk.f32.vlgmr.msra.gmra.mrb[0].mxu0 %vm414_vm1, %v2016_v17  ;;  %2175 = vmatprep.mubr.msk.f32.mxu1 %vm414_vm1, %v1948_v18  ;;  %v1286_v40 = vld [vmem:[%s2551_s24 + $0x48] sm:$0xff]  ;;  %v1288_v44 = vld [vmem:[%s2551_s24 + $0x78] sm:$0xff]  ;;  %v1971_v45 = vld [vmem:[%s2484_s8 + $0x40] sm:$0xff] }
  0x1e   : > { %2249 = vmatpush3.msk.msra.mxu0 %vm439_vm0, %v2033_v10  ;;  %2239 = vmatprep.mubr.msk.f32.mxu0 %vm414_vm1, %v2017_v19  ;;  %v1970_v43 = vld [vmem:[%s2484_s8 + $0x28] sm:$0xff]  ;;  %v1289_v46 = vld [vmem:[%s2551_s24 + $0x90] sm:$0xff]  ;;  %v1972_v47 = vld [vmem:[%s2484_s8 + $0x58] sm:$0xff] }
  0x1f   : > { %2262 = vmatprep.subr.msk.mxu0 %vm439_vm0, %v2051_v20  ;;  %v1290_v48 = vld [vmem:[%s2551_s24 + $0xa8] sm:$0xff]  ;;  %v1973_v49 = vld [vmem:[%s2484_s8 + $0x70] sm:$0xff]  ;;  %v2044_v52 = vld [vmem:[%s2551_s24 + $0x20] sm:$0xff] }
  0x20   : > { %2176 = vmatmul.mubr.msk.f32.gmra.mrb[6].mxu1 %vm414_vm1, %v1949_v21  ;;  %v2043_v50 = vld [vmem:[%s2551_s24 + $0x8] sm:$0xff]  ;;  %v1975_v53 = vld [vmem:[%s2484_s8 + $0xa0] sm:$0xff]  ;;  %v2045_v54 = vld [vmem:[%s2551_s24 + $0x38] sm:$0xff] }
  0x21   : > { %2240 = vmatmul.mubr.msk.f32.gmra.mrb[2].mxu0 %vm414_vm1, %v2018_v22  ;;  %2180 = vmatprep.mubr.msk.f32.mxu1 %vm414_vm1, %v394_v23  ;;  %v1974_v51 = vld [vmem:[%s2484_s8 + $0x88] sm:$0xff]  ;;  %v1976_v55 = vld [vmem:[%s2484_s8 + $0xb8] sm:$0xff]  ;;  %v2046_v56 = vld [vmem:[%s2551_s24 + $0x50] sm:$0xff] }
  0x22   : > { %2242 = vmatprep.mubr.msk.f32.mxu0 %vm414_vm1, %v2019_v24  ;;  %v831_v57 = vld [vmem:[%s2490_s11] sm:$0xff]  ;;  %v2047_v58 = vld [vmem:[%s2551_s24 + $0x68] sm:$0xff]  ;;  %v832_v59 = vld [vmem:[%s2490_s11 + $0x18] sm:$0xff] }
  0x23   : > { %v2048_v60 = vld [vmem:[%s2551_s24 + $0x80] sm:$0xff]  ;;  %v833_v61 = vld [vmem:[%s2490_s11 + $0x30] sm:$0xff]  ;;  %v2049_v62 = vld [vmem:[%s2551_s24 + $0x98] sm:$0xff] }
  0x24   : > { %2181 = vmatmul.mubr.msk.f32.vlgmr.msra.gmra.mrb[0].mxu1 %vm414_vm1, %v395_v25  ;;  %v834_v63 = vld [vmem:[%s2490_s11 + $0x48] sm:$0xff]  ;;  %v2050_v0 = vld [vmem:[%s2551_s24 + $0xb0] sm:$0xff]  ;;  %v835_v2 = vld [vmem:[%s2490_s11 + $0x60] sm:$0xff] }
  0x25   : > { %2243 = vmatmul.mubr.msk.f32.gmra.mrb[4].mxu0 %vm414_vm1, %v2020_v26  ;;  %2193 = vmatpush3.msk.msra.mxu1 %vm439_vm0, %v1977_v11  ;;  %v2061_v3 = vld [vmem:[%s2551_s24 + $0x10] sm:$0xff]  ;;  %v2062_v4 = vld [vmem:[%s2551_s24 + $0x28] sm:$0xff]  ;;  %v2063_v6 = vld [vmem:[%s2551_s24 + $0x40] sm:$0xff] }
  0x26   : > { %2183 = vmatprep.mubr.msk.f32.mxu1 %vm414_vm1, %v396_v27  ;;  %2245 = vmatprep.mubr.msk.f32.mxu0 %vm414_vm1, %v2021_v28  ;;  %v837_v5 = vld [vmem:[%s2490_s11 + $0x90] sm:$0xff]  ;;  %v838_v7 = vld [vmem:[%s2490_s11 + $0xa8] sm:$0xff]  ;;  %v2064_v8 = vld [vmem:[%s2551_s24 + $0x58] sm:$0xff] }
  0x27   : > { %2206 = vmatprep.subr.msk.mxu1 %vm439_vm0, %v1987_v29  ;;  %v2001_v9 = vld [vmem:[%s2490_s11 + $0x68] sm:$0xff]  ;;  %v2065_v10 = vld [vmem:[%s2551_s24 + $0x70] sm:$0xff]  ;;  %v2002_v11 = vld [vmem:[%s2490_s11 + $0x80] sm:$0xff] }
  0x28   : > { %2184 = vmatmul.mubr.msk.f32.gmra.mrb[2].mxu1 %vm414_vm1, %v397_v30  ;;  %v2066_v12 = vld [vmem:[%s2551_s24 + $0x88] sm:$0xff]  ;;  %v2003_v13 = vld [vmem:[%s2490_s11 + $0x98] sm:$0xff]  ;;  %v2067_v14 = vld [vmem:[%s2551_s24 + $0xa0] sm:$0xff] }
  0x29   : > { %2246 = vmatmul.mubr.msk.f32.gmra.mrb[6].mxu0 %vm414_vm1, %v2022_v31  ;;  %2186 = vmatprep.mubr.msk.f32.mxu1 %vm414_vm1, %v398_v32  ;;  %v2004_v15 = vld [vmem:[%s2490_s11 + $0xb0] sm:$0xff]  ;;  %v2068_v16 = vld [vmem:[%s2551_s24 + $0xb8] sm:$0xff]  ;;  %v2079_v22 = vld [vmem:[%s2711_s4] ss:$0 sm:$0xff] }
  0x2a   : > { %2250 = vmatprep.mubr.msk.f32.mxu0 %vm414_vm1, %v1283_v33 }
  0x2c   : > { %2187 = vmatmul.mubr.msk.f32.gmra.mrb[4].mxu1 %vm414_vm1, %v399_v34 }
  0x2d   : > { %2251 = vmatmul.mubr.msk.f32.vlgmr.msra.gmra.mrb[0].mxu0 %vm414_vm1, %v1284_v35  ;;  %2189 = vmatprep.mubr.msk.f32.mxu1 %vm414_vm1, %v400_v36 }
  0x2e   : > { %2263 = vmatpush3.msk.msra.mxu0 %vm439_vm0, %v2051_v20  ;;  %2253 = vmatprep.mubr.msk.f32.mxu0 %vm414_vm1, %v1285_v37 }
  0x2f   : > { %2276 = vmatprep.subr.msk.mxu0 %vm439_vm0, %v2069_v38 }
  0x30   : > { %2190 = vmatmul.mubr.msk.f32.gmra.mrb[6].mxu1 %vm414_vm1, %v401_v39 }
  0x31   : > { %2254 = vmatmul.mubr.msk.f32.gmra.mrb[2].mxu0 %vm414_vm1, %v1286_v40  ;;  %2194 = vmatprep.mubr.msk.f32.mxu1 %vm414_vm1, %v1969_v41 }
  0x32   : > { %2256 = vmatprep.mubr.msk.f32.mxu0 %vm414_vm1, %v1287_v42 }
  0x34   : > { %2195 = vmatmul.mubr.msk.f32.vlgmr.msra.gmra.mrb[0].mxu1 %vm414_vm1, %v1970_v43 }
  0x35   : > { %2257 = vmatmul.mubr.msk.f32.gmra.mrb[4].mxu0 %vm414_vm1, %v1288_v44  ;;  %2207 = vmatpush3.msk.msra.mxu1 %vm439_vm0, %v1987_v29 }
  0x36   : > { %2197 = vmatprep.mubr.msk.f32.mxu1 %vm414_vm1, %v1971_v45  ;;  %2259 = vmatprep.mubr.msk.f32.mxu0 %vm414_vm1, %v1289_v46 }
  0x37   : > { %2290 = vmatprep.subr.msk.mxu1 %vm439_vm0, %v2459_v1 }
  0x38   : > { %2198 = vmatmul.mubr.msk.f32.gmra.mrb[2].mxu1 %vm414_vm1, %v1972_v47 }
  0x39   : > { %2260 = vmatmul.mubr.msk.f32.gmra.mrb[6].mxu0 %vm414_vm1, %v1290_v48  ;;  %2200 = vmatprep.mubr.msk.f32.mxu1 %vm414_vm1, %v1973_v49 }
  0x3a   : > { %2264 = vmatprep.mubr.msk.f32.mxu0 %vm414_vm1, %v2043_v50 }
  0x3c   : > { %2201 = vmatmul.mubr.msk.f32.gmra.mrb[4].mxu1 %vm414_vm1, %v1974_v51 }
  0x3d   : > { %2265 = vmatmul.mubr.msk.f32.vlgmr.msra.gmra.mrb[0].mxu0 %vm414_vm1, %v2044_v52  ;;  %2203 = vmatprep.mubr.msk.f32.mxu1 %vm414_vm1, %v1975_v53 }
  0x3e   : > { %2277 = vmatpush3.msk.msra.mxu0 %vm439_vm0, %v2069_v38  ;;  %2267 = vmatprep.mubr.msk.f32.mxu0 %vm414_vm1, %v2045_v54 }
  0x40   : > { %2204 = vmatmul.mubr.msk.f32.gmra.mrb[6].mxu1 %vm414_vm1, %v1976_v55 }
  0x41   : > { %2268 = vmatmul.mubr.msk.f32.gmra.mrb[2].mxu0 %vm414_vm1, %v2046_v56  ;;  %2208 = vmatprep.mubr.msk.f32.mxu1 %vm414_vm1, %v831_v57 }
  0x42   : > { %2270 = vmatprep.mubr.msk.f32.mxu0 %vm414_vm1, %v2047_v58 }
  0x44   : > { %2209 = vmatmul.mubr.msk.f32.vlgmr.msra.gmra.mrb[0].mxu1 %vm414_vm1, %v832_v59 }
  0x45   : > { %2271 = vmatmul.mubr.msk.f32.gmra.mrb[4].mxu0 %vm414_vm1, %v2048_v60  ;;  %2291 = vmatpush3.msk.msra.mxu1 %vm439_vm0, %v2459_v1  ;;  %v836_v1 = vld [vmem:[%s2490_s11 + $0x78] sm:$0xff] }
  0x46   : > { %2211 = vmatprep.mubr.msk.f32.mxu1 %vm414_vm1, %v833_v61  ;;  %2273 = vmatprep.mubr.msk.f32.mxu0 %vm414_vm1, %v2049_v62 }
  0x48   : > { %2212 = vmatmul.mubr.msk.f32.gmra.mrb[2].mxu1 %vm414_vm1, %v834_v63 }
  0x49   : > { %2274 = vmatmul.mubr.msk.f32.gmra.mrb[6].mxu0 %vm414_vm1, %v2050_v0  ;;  %2214 = vmatprep.mubr.msk.f32.mxu1 %vm414_vm1, %v835_v2 }
  0x4a   : > { %2278 = vmatprep.mubr.msk.f32.mxu0 %vm414_vm1, %v2061_v3 }
  0x4c   : > { %2215 = vmatmul.mubr.msk.f32.gmra.mrb[4].mxu1 %vm414_vm1, %v836_v1 }
  0x4d   : > { %2279 = vmatmul.mubr.msk.f32.vlgmr.msra.gmra.mrb[0].mxu0 %vm414_vm1, %v2062_v4  ;;  %2217 = vmatprep.mubr.msk.f32.mxu1 %vm414_vm1, %v837_v5 }
  0x4e   : > { %2281 = vmatprep.mubr.msk.f32.mxu0 %vm414_vm1, %v2063_v6 }
  0x50   : > { %2218 = vmatmul.mubr.msk.f32.gmra.mrb[6].mxu1 %vm414_vm1, %v838_v7 }
  0x51   : > { %2282 = vmatmul.mubr.msk.f32.gmra.mrb[2].mxu0 %vm414_vm1, %v2064_v8  ;;  %2228 = vmatprep.mubr.msk.f32.mxu1 %vm414_vm1, %v2001_v9 }
  0x52   : > { %2284 = vmatprep.mubr.msk.f32.mxu0 %vm414_vm1, %v2065_v10 }
  0x54   : > { %2229 = vmatmul.mubr.msk.f32.vlgmr.msra.gmra.mrb[4].mxu1 %vm414_vm1, %v2002_v11 }
  0x55   : > { %2285 = vmatmul.mubr.msk.f32.gmra.mrb[4].mxu0 %vm414_vm1, %v2066_v12  ;;  %2231 = vmatprep.mubr.msk.f32.mxu1 %vm414_vm1, %v2003_v13 }
  0x56   : > { %2287 = vmatprep.mubr.msk.f32.mxu0 %vm414_vm1, %v2067_v14 }
  0x58   : > { %2232 = vmatmul.mubr.msk.f32.gmra.mrb[6].mxu1 %vm414_vm1, %v2004_v15 }
  0x59   : > { %2288 = vmatmul.mubr.msk.f32.gmra.mrb[6].mxu0 %vm414_vm1, %v2068_v16 }
 0x117   : > { %v2210_v17 = vpop.f32.mrb[0].mxu1 }
 0x118   : > { %v934_v18 = vpop.f32.mrb[1].mxu1 }
 0x11b   : > { %v2213_v19 = vpop.f32.mrb[2].mxu1 }
 0x11c   : > { %v944_v20 = vpop.f32.mrb[3].mxu1 }
 0x120   : > { %v2280_v21 = vpop.f32.mrb[0].mxu0 }
 0x121   : > { %v2292_v23 = vadd.f32 %v2280_v21, %v2210_v17  ;;  %v1688_v24 = vpop.f32.mrb[1].mxu0 }
 0x122   : > { %v2293_v25 = vadd.f32 %v1688_v24, %v934_v18 }
 0x123   : > { %v1743_v26 = vadd.f32 %v2292_v23, %v2079_v22 }
 0x124   : > { %v1742_v27 = vadd.f32 %v2293_v25, %v2079_v22  ;;  %v2283_v28 = vpop.f32.mrb[2].mxu0 }
 0x125   : > { %1751 = vst.msk [vmem:[%s2680_s9 + $0x8] sm:$0xff] %vm414_vm1, %v1743_v26  ;;  %v2294_v29 = vadd.f32 %v2283_v28, %v2213_v19  ;;  %v1698_v30 = vpop.f32.mrb[3].mxu0 }
 0x126   : > { %1750 = vst.msk [vmem:[%s2680_s9] sm:$0xff] %vm414_vm1, %v1742_v27  ;;  %v2295_v31 = vadd.f32 %v1698_v30, %v944_v20 }
 0x127   : > { %v1745_v32 = vadd.f32 %v2294_v29, %v2079_v22  ;;  %v2230_v34 = vpop.f32.mrb[4].mxu1 }
 0x128   : > { %v1744_v33 = vadd.f32 %v2295_v31, %v2079_v22  ;;  %v2286_v35 = vpop.f32.mrb[4].mxu0  ;;  %v1105_v37 = vpop.f32.mrb[5].mxu1 }
 0x129   : > { %1753 = vst.msk [vmem:[%s2680_s9 + $0x18] sm:$0xff] %vm414_vm1, %v1745_v32  ;;  %v2296_v36 = vadd.f32 %v2286_v35, %v2230_v34  ;;  %v1708_v38 = vpop.f32.mrb[5].mxu0 }
 0x12a   : > { %1752 = vst.msk [vmem:[%s2680_s9 + $0x10] sm:$0xff] %vm414_vm1, %v1744_v33  ;;  %v2297_v39 = vadd.f32 %v1708_v38, %v1105_v37 }
 0x12b   : > { %v1747_v40 = vadd.f32 %v2296_v36, %v2079_v22  ;;  %v2233_v42 = vpop.f32.mrb[6].mxu1 }
 0x12c   : > { %v1746_v41 = vadd.f32 %v2297_v39, %v2079_v22  ;;  %v2289_v43 = vpop.f32.mrb[6].mxu0  ;;  %v1115_v45 = vpop.f32.mrb[7].mxu1 }
 0x12d   : > { %1755 = vst.msk [vmem:[%s2680_s9 + $0x28] sm:$0xff] %vm414_vm1, %v1747_v40  ;;  %v2298_v44 = vadd.f32 %v2289_v43, %v2233_v42  ;;  %v1718_v46 = vpop.f32.mrb[7].mxu0 }
 0x12e   : > { %1754 = vst.msk [vmem:[%s2680_s9 + $0x20] sm:$0xff] %vm414_vm1, %v1746_v41  ;;  %v2299_v47 = vadd.f32 %v1718_v46, %v1115_v45 }
 0x12f   : > { %v1749_v48 = vadd.f32 %v2298_v44, %v2079_v22 }
 0x130   : > { %v1748_v49 = vadd.f32 %v2299_v47, %v2079_v22 }
 0x131   : > { %1757 = vst.msk [vmem:[%s2680_s9 + $0x38] sm:$0xff] %vm414_vm1, %v1749_v48 }
 0x132   : > { %1756 = vst.msk [vmem:[%s2680_s9 + $0x30] sm:$0xff] %vm414_vm1, %v1748_v49 }
 0x133 PF: > { %s15_s20 = sadd.s32 1, %s2403_s20   ;;  %s2713_s18 = smov %s2399_s19 }
 0x134   : > { %p12_p5 = scmp.ge.s32.totalorder %s15_s20, 4   ;;  %s2714_s19 = smov %s2716_s21 }
 0x136   :  { %14 = sbr.rel (!%p12_p5) target bundleno = 2 (0x2), region = 96 }

</bundles_post_ra>
